<compile_context>
chip_gen: v7x
topology: tpu7x:2x2x1
jax: 0.10.0
libtpu: 0.0.40
codegen_flags: <defaults>
</compile_context>

<pallas_src>
import math
from functools import partial

import numpy as np
import jax
import jax.numpy as jnp
from jax import lax
from jax.experimental import pallas as pl
from jax.experimental.pallas import tpu as pltpu


# x-column -> (name, vocab size), matching the PyTorch module
_FEATURE_SPECS = {
    0: ("month", 13),
    1: ("day", 32),
    2: ("weekday", 7),
    3: ("hour", 24),
    4: ("minute", 4),
}


def _round_up(x, m):
    return ((x + m - 1) // m) * m


def _fixed_embedding_weights(c_in, d_model):
    """FixedEmbedding weight table (sin/cos), identical to the PyTorch init."""
    position = np.arange(c_in, dtype=np.float32)[:, None]
    div_term = np.exp(
        np.arange(0, d_model, 2, dtype=np.float32) * -(math.log(10000.0) / d_model)
    ).astype(np.float32)
    w = np.zeros((c_in, d_model), dtype=np.float32)
    w[:, 0::2] = np.sin(position * div_term)
    w[:, 1::2] = np.cos(position * div_term)
    return w


def build_temporal_tables(d_model, freq="h"):
    """Stack all per-feature FixedEmbedding tables into one padded table.

    Returns (stacked_table (R_pad, d_model), feature_columns, row_offsets).
    """
    cols = [0, 1, 2, 3] + ([4] if freq == "t" else [])
    tables, offsets, off = [], [], 0
    for c in cols:
        _, size = _FEATURE_SPECS[c]
        tables.append(_fixed_embedding_weights(size, d_model))
        offsets.append(off)
        off += size
    stacked = np.concatenate(tables, axis=0)  # (R, d_model), R <= 80
    r = stacked.shape[0]
    r_pad = max(128, _round_up(r, 8))         # pad rows -> clean MXU contraction dim
    if r_pad != r:
        stacked = np.pad(stacked, ((0, r_pad - r), (0, 0)))
    return jnp.asarray(stacked, dtype=jnp.float32), tuple(cols), tuple(offsets)


def _temporal_embedding_kernel(x_ref, tbl_ref, o_ref, *, feat_cols, feat_offsets):
    # x_ref:  (T, C) int32 time-feature indices for this token tile
    # tbl_ref:(R, D) float32 stacked embedding table (resident across grid steps)
    # o_ref:  (T, D) float32 summed temporal embedding
    idx = x_ref[...]                                   # (T, C)
    T = idx.shape[0]
    R = tbl_ref.shape[0]

    col = lax.broadcasted_iota(jnp.int32, (T, R), 1)   # row ids of the stacked table
    multi_hot = jnp.zeros((T, R), dtype=jnp.float32)
    # Static Python loop over the 4 (or 5) time features; row ranges are disjoint,
    # so summing the one-hots gives a multi-hot whose matmul = sum of embeddings.
    for c, off in zip(feat_cols, feat_offsets):
        target = idx[:, c:c + 1] + off                 # (T, 1), broadcasts over lanes
        multi_hot = multi_hot + (col == target).astype(jnp.float32)

    out = jnp.dot(multi_hot, tbl_ref[...], preferred_element_type=jnp.float32)
    o_ref[...] = out.astype(o_ref.dtype)


def temporal_embedding_forward(x, table, feat_cols, feat_offsets, *, token_tile=512):
    """Pallas TPU forward for TemporalEmbedding. x: (B, L, C) ints -> (B, L, d_model)."""
    B, L, C = x.shape
    R, D = table.shape

    x_flat = x.reshape(B * L, C).astype(jnp.int32)     # free reshape, no HBM transpose
    T_total = B * L

    tile = min(token_tile, _round_up(T_total, 8))
    tile = _round_up(tile, 8)
    T_pad = _round_up(T_total, tile)
    if T_pad != T_total:
        x_flat = jnp.pad(x_flat, ((0, T_pad - T_total), (0, 0)))  # index 0 is always valid

    kernel = partial(
        _temporal_embedding_kernel, feat_cols=feat_cols, feat_offsets=feat_offsets
    )

    out = pl.pallas_call(
        kernel,
        out_shape=jax.ShapeDtypeStruct((T_pad, D), jnp.float32),
        grid_spec=pltpu.PrefetchScalarGridSpec(
            num_scalar_prefetch=0,
            grid=(T_pad // tile,),
            in_specs=[
                pl.BlockSpec((tile, C), lambda i: (i, 0)),  # token-tile of indices
                pl.BlockSpec((R, D), lambda i: (0, 0)),     # whole stacked table, resident
            ],
            out_specs=pl.BlockSpec((tile, D), lambda i: (i, 0)),  # lane-dense output slab
        ),
        compiler_params=pltpu.CompilerParams(
            dimension_semantics=("parallel",),
        ),
    )(x_flat, table)

    return out[:T_total].reshape(B, L, D)


def _reference(x, d_model, freq="h"):
    """Pure-JAX reference mirroring the PyTorch TemporalEmbedding forward."""
    cols = [0, 1, 2, 3] + ([4] if freq == "t" else [])
    out = 0.0
    for c in cols:
        _, size = _FEATURE_SPECS[c]
        w = jnp.asarray(_fixed_embedding_weights(size, d_model))
        out = out + w[x[..., c]]
    return out


if __name__ == "__main__":
    key = jax.random.PRNGKey(0)
    B, L, C, d_model = 2, 8, 4, 32
    freq = "h"  # 'h' => 4 time features (no minute), matching the module default

    k_m, k_d, k_w, k_h = jax.random.split(key, 4)
    month = jax.random.randint(k_m, (B, L, 1), 0, 13, dtype=jnp.int32)
    day = jax.random.randint(k_d, (B, L, 1), 0, 32, dtype=jnp.int32)
    weekday = jax.random.randint(k_w, (B, L, 1), 0, 7, dtype=jnp.int32)
    hour = jax.random.randint(k_h, (B, L, 1), 0, 24, dtype=jnp.int32)
    x = jnp.concatenate([month, day, weekday, hour], axis=-1)  # (B, L, 4)

    table, feat_cols, feat_offsets = build_temporal_tables(d_model, freq)

    out = temporal_embedding_forward(x, table, feat_cols, feat_offsets)
    out = jax.block_until_ready(out)

    ref = _reference(x, d_model, freq)
    assert out.shape == (B, L, d_model), out.shape
    assert jnp.allclose(out, ref, atol=1e-5, rtol=1e-5), "mismatch vs reference"

    print("KERNEL_OK")
</pallas_src>

<mosaic_0001>
module attributes {stable_mosaic.version = 11 : i64} {
  func.func @_temporal_embedding_kernel(%arg0: i32, %arg1: memref<16x4xi32, #tpu.memory_space<vmem>>, %arg2: memref<128x32xf32, #tpu.memory_space<vmem>>, %arg3: memref<16x32xf32, #tpu.memory_space<vmem>>) attributes {dimension_semantics = [#tpu.dimension_semantics<parallel>], iteration_bounds = array<i64: 1>, scalar_prefetch = 0 : i64, scratch_operands = 0 : i64, tpu.core_type = #tpu.core_type<tc>, window_params = [{transform_indices = @transform_0, window_bounds = array<i64: 16, 4>}, {pipeline_mode = #tpu.pipeline_mode<synchronous>, transform_indices = @transform_1, window_bounds = array<i64: 128, 32>}, {transform_indices = @transform_2, window_bounds = array<i64: 16, 32>}]} {
    %c0 = arith.constant 0 : index
    %c0_0 = arith.constant 0 : index
    %0 = vector.load %arg1[%c0, %c0_0] : memref<16x4xi32, #tpu.memory_space<vmem>>, vector<16x4xi32>
    %1 = tpu.iota {dimensions = array<i32: 1>} : vector<16x128xi32>
    %cst = arith.constant 0.000000e+00 : f32
    %2 = vector.broadcast %cst : f32 to vector<16x128xf32>
    %3 = vector.extract_strided_slice %0 {offsets = [0, 0], sizes = [16, 1], strides = [1, 1]} : vector<16x4xi32> to vector<16x1xi32>
    %c0_i32 = arith.constant 0 : i32
    %4 = vector.broadcast %c0_i32 : i32 to vector<16x1xi32>
    %5 = arith.addi %3, %4 : vector<16x1xi32>
    %6 = vector.broadcast %5 : vector<16x1xi32> to vector<16x128xi32>
    %7 = arith.cmpi eq, %1, %6 : vector<16x128xi32>
    %8 = arith.extui %7 : vector<16x128xi1> to vector<16x128xi32>
    %9 = arith.sitofp %8 : vector<16x128xi32> to vector<16x128xf32>
    %10 = arith.addf %2, %9 : vector<16x128xf32>
    %11 = vector.extract_strided_slice %0 {offsets = [0, 1], sizes = [16, 1], strides = [1, 1]} : vector<16x4xi32> to vector<16x1xi32>
    %c13_i32 = arith.constant 13 : i32
    %12 = vector.broadcast %c13_i32 : i32 to vector<16x1xi32>
    %13 = arith.addi %11, %12 : vector<16x1xi32>
    %14 = vector.broadcast %13 : vector<16x1xi32> to vector<16x128xi32>
    %15 = arith.cmpi eq, %1, %14 : vector<16x128xi32>
    %16 = arith.extui %15 : vector<16x128xi1> to vector<16x128xi32>
    %17 = arith.sitofp %16 : vector<16x128xi32> to vector<16x128xf32>
    %18 = arith.addf %10, %17 : vector<16x128xf32>
    %19 = vector.extract_strided_slice %0 {offsets = [0, 2], sizes = [16, 1], strides = [1, 1]} : vector<16x4xi32> to vector<16x1xi32>
    %c45_i32 = arith.constant 45 : i32
    %20 = vector.broadcast %c45_i32 : i32 to vector<16x1xi32>
    %21 = arith.addi %19, %20 : vector<16x1xi32>
    %22 = vector.broadcast %21 : vector<16x1xi32> to vector<16x128xi32>
    %23 = arith.cmpi eq, %1, %22 : vector<16x128xi32>
    %24 = arith.extui %23 : vector<16x128xi1> to vector<16x128xi32>
    %25 = arith.sitofp %24 : vector<16x128xi32> to vector<16x128xf32>
    %26 = arith.addf %18, %25 : vector<16x128xf32>
    %27 = vector.extract_strided_slice %0 {offsets = [0, 3], sizes = [16, 1], strides = [1, 1]} : vector<16x4xi32> to vector<16x1xi32>
    %c52_i32 = arith.constant 52 : i32
    %28 = vector.broadcast %c52_i32 : i32 to vector<16x1xi32>
    %29 = arith.addi %27, %28 : vector<16x1xi32>
    %30 = vector.broadcast %29 : vector<16x1xi32> to vector<16x128xi32>
    %31 = arith.cmpi eq, %1, %30 : vector<16x128xi32>
    %32 = arith.extui %31 : vector<16x128xi1> to vector<16x128xi32>
    %33 = arith.sitofp %32 : vector<16x128xi32> to vector<16x128xf32>
    %34 = arith.addf %26, %33 : vector<16x128xf32>
    %c0_1 = arith.constant 0 : index
    %c0_2 = arith.constant 0 : index
    %35 = vector.load %arg2[%c0_1, %c0_2] : memref<128x32xf32, #tpu.memory_space<vmem>>, vector<128x32xf32>
    %cst_3 = arith.constant dense<0.000000e+00> : vector<16x32xf32>
    %36 = tpu.matmul %34, %35, %cst_3 {dimension_numbers = #tpu.dot_dimension_numbers<[1], [0], [0], [1], [0, 0, 1, 1], [], []>} : vector<16x128xf32>, vector<128x32xf32>, vector<16x32xf32> -> vector<16x32xf32>
    %c0_4 = arith.constant 0 : index
    %c0_5 = arith.constant 0 : index
    %37 = vector.load %arg3[%c0_4, %c0_5] : memref<16x32xf32, #tpu.memory_space<vmem>>, vector<16x32xf32>
    tpu.vector_store %arg3[%c0_4, %c0_5], %36 {strides = array<i32>} : memref<16x32xf32, #tpu.memory_space<vmem>>, vector<16x32xf32>,
    return
  }
  func.func @transform_0(%arg0: i32) -> (i32, i32) {
    %c0_i32 = arith.constant 0 : i32
    %c0_i32_0 = arith.constant 0 : i32
    return %arg0, %c0_i32 : i32, i32
  }
  func.func @transform_1(%arg0: i32) -> (i32, i32) {
    %c0_i32 = arith.constant 0 : i32
    %c0_i32_0 = arith.constant 0 : i32
    %c0_i32_1 = arith.constant 0 : i32
    return %c0_i32, %c0_i32_0 : i32, i32
  }
  func.func @transform_2(%arg0: i32) -> (i32, i32) {
    %c0_i32 = arith.constant 0 : i32
    %c0_i32_0 = arith.constant 0 : i32
    return %arg0, %c0_i32 : i32, i32
  }
}

</mosaic_0001>

<bundles_post_ra>
// kernel: tpu_custom_call.1
= control target key start
LH: loop header
LB: loop body
LE: loop exit
PB: predicated region body
PF: predicated region fallthrough
CT: control target
= control target key end

     0   :  { %v321_v2 = vmov 0   ;;  %s410_s0 = inlined_call_operand.vmem [shape: s32[16,4], index: 0, kind: input, shape index: {}]   ;;  %s411_s1 = inlined_call_operand.vmem [shape: f32[128,32], index: 1, kind: input, shape index: {}]   ;;  %s412_s2 = inlined_call_operand.hbm [shape: f32[16,32], index: 2, kind: output, shape index: {}]  }
   0x1   :  { %v13_v0 = vld [vmem:[%s410_s0 + $0x8] sm:$0xff]  ;;  %v12_v1 = vld [vmem:[%s410_s0] sm:$0xff]  ;;  %291 = vset.pattern.permute.xlu1 %v321_v2  ;;  %289 = vset.pattern.permute.xlu0 %v321_v2  ;;  %v80_v6 = vld [vmem:[%s411_s1 + $0x10] sm:$0xff] }
   0x2   :  { %v78_v3 = vld [vmem:[%s411_s1] sm:$0xff]  ;;  %v79_v4 = vld [vmem:[%s411_s1 + $0x8] sm:$0xff]  ;;  %20 = vperm.xlu1 %291, %v13_v0   ;;  %17 = vperm.xlu0 %289, %v12_v1   ;;  %v81_v7 = vld [vmem:[%s411_s1 + $0x18] sm:$0xff]  ;;  %v31_v8 = vadd.s32 13, %v13_v0  ;;  %v30_v9 = vadd.s32 13, %v12_v1 }
   0x3   :  { %v249_v5 = vpack.c.bf16 %v79_v4, %v78_v3  ;;  %v82_v10 = vld [vmem:[%s411_s1 + $0x20] sm:$0xff]  ;;  %v83_v11 = vld [vmem:[%s411_s1 + $0x28] sm:$0xff]  ;;  %v253_v12 = vpack.c.bf16 %v81_v7, %v80_v6 }
   0x5   :  { %250 = vmatprep.subr.bf16.mxu0 %v249_v5 }
   0x6   :  { %7 = vsyncpa [#allocation3], 0  ;;  %252 = vmatpush3.bf16.msra.mxu0 %v249_v5  ;;  %v322_v13 = vmov 1   ;;  %v257_v14 = vpack.c.bf16 %v83_v11, %v82_v10  ;;  %v84_v15 = vld [vmem:[%s411_s1 + $0x30] sm:$0xff]  ;;  %v85_v16 = vld [vmem:[%s411_s1 + $0x38] sm:$0xff]  ;;  %v46_v17 = vadd.s32 45, %v12_v1  ;;  %v14_v36 = vlaneseq }
   0x7   :  { %292 = vset.pattern.permute.xlu1 %v322_v13  ;;  %290 = vset.pattern.permute.xlu0 %v322_v13  ;;  %v47_v18 = vadd.s32 45, %v13_v0  ;;  %v261_v19 = vpack.c.bf16 %v85_v16, %v84_v15  ;;  %v323_v20 = vmov 2   ;;  %v86_v21 = vld [vmem:[%s411_s1 + $0x40] sm:$0xff]  ;;  %v87_v22 = vld [vmem:[%s411_s1 + $0x48] sm:$0xff]  ;;  %v62_v23 = vadd.s32 52, %v12_v1  ;;  %v88_v25 = vld [vmem:[%s411_s1 + $0x50] sm:$0xff] }
   0x8   :  { %36 = vperm.xlu1 %292, %v31_v8   ;;  %33 = vperm.xlu0 %290, %v30_v9   ;;  %v265_v24 = vpack.c.bf16 %v87_v22, %v86_v21  ;;  %v89_v26 = vld [vmem:[%s411_s1 + $0x58] sm:$0xff]  ;;  %v324_v27 = vmov 3   ;;  %v63_v28 = vadd.s32 52, %v13_v0  ;;  %v90_v30 = vld [vmem:[%s411_s1 + $0x60] sm:$0xff]  ;;  %v91_v31 = vld [vmem:[%s411_s1 + $0x68] sm:$0xff]  ;;  %v15_v39 = vand.u32 127, %v14_v36 }
   0x9   :  { %254 = vmatprep.subr.bf16.mxu0 %v253_v12  ;;  %v269_v29 = vpack.c.bf16 %v89_v26, %v88_v25  ;;  %v273_v32 = vpack.c.bf16 %v91_v31, %v90_v30  ;;  %v92_v33 = vld [vmem:[%s411_s1 + $0x70] sm:$0xff]  ;;  %v93_v34 = vld [vmem:[%s411_s1 + $0x78] sm:$0xff]  ;;  %v325_v42 = vmov 0.0   ;;  %s326_s1 = smov [#allocation2]   ;;  %vm169_vm8 = vcmask 261120  }
   0xa   :  { %256 = vmatpush3.bf16.msra.mxu0 %v253_v12  ;;  %v277_v35 = vpack.c.bf16 %v93_v34, %v92_v33  ;;  %s177_s16 = sshll.u32 %s326_s1, 4  ;;  %s178_s16 = int_to_ptr.vmem [resolvable:$true] %s177_s16 }
   0xb   :  { %258 = vmatprep.subr.bf16.mxu0 %v257_v14  ;;  %s297_s17 = scalar_lea.vmem %s178_s16, 256  ;;  %p302_p1 = scmp.lt.s32.totalorder %s178_s16, %s178_s16 }
   0xc   :  { %293 = vset.pattern.permute.xlu1 %v323_v20  ;;  %294 = vset.pattern.permute.xlu0 %v323_v20  ;;  %p298_p0 = scmp.ne.s32.totalorder %s178_s16, %s297_s17  ;;  %p303_p2 = scmp.lt.s32.totalorder %s297_s17, %s297_s17 }
   0xd   :  { %49 = vperm.xlu1 %293, %v46_v17   ;;  %52 = vperm.xlu0 %294, %v47_v18  }
   0xe   :  { %260 = vmatpush3.bf16.msra.mxu0 %v257_v14  ;;  %p304_p3 = por %p303_p2, %p302_p1 }
   0xf   :  { %262 = vmatprep.subr.bf16.mxu0 %v261_v19 }
  0x10   :  { %p305_p4 = pnand %p304_p3, %p298_p0 }
  0x11   :  { %295 = vset.pattern.permute.xlu1 %v324_v27  ;;  %296 = vset.pattern.permute.xlu0 %v324_v27 }
  0x12   :  { %65 = vperm.xlu1 %295, %v62_v23   ;;  %264 = vmatpush3.bf16.msra.mxu0 %v261_v19 }
  0x13   :  { %266 = vmatprep.subr.bf16.mxu0 %v265_v24 }
  0x16   :  { %68 = vperm.xlu1 %295, %v63_v28   ;;  %268 = vmatpush3.bf16.msra.mxu0 %v265_v24 }
  0x17   :  { %270 = vmatprep.subr.bf16.mxu0 %v269_v29 }
  0x1a   :  { %272 = vmatpush3.bf16.msra.mxu0 %v269_v29 }
  0x1b   :  { %274 = vmatprep.subr.bf16.mxu0 %v273_v32 }
  0x1e   :  { %276 = vmatpush3.bf16.msra.mxu0 %v273_v32 }
  0x1f   :  { %278 = vmatprep.subr.bf16.mxu0 %v277_v35 }
  0x22   :  { %280 = vmatpush3.bf16.msra.mxu0 %v277_v35 }
  0x81   :  { %v21_v37 = vpop.permute.xlu1 %20  ;;  %v18_v38 = vpop.permute.xlu0 %17 }
  0x82   :  { %vm22_vm0 = vcmp.eq.s32.totalorder %v15_v39, %v18_v38  ;;  %vm23_vm4 = vcmp.eq.s32.totalorder %v15_v39, %v21_v37 }
  0x83   :  { %v188_v43 = vsel %vm22_vm0, 1.0, %v325_v42  ;;  %v189_v52 = vsel %vm23_vm4, 1.0, %v325_v42 }
  0x87   :  { %v37_v40 = vpop.permute.xlu1 %36  ;;  %v34_v41 = vpop.permute.xlu0 %33 }
  0x88   :  { %vm38_vm1 = vcmp.eq.s32.totalorder %v15_v39, %v34_v41  ;;  %vm39_vm3 = vcmp.eq.s32.totalorder %v15_v39, %v37_v40 }
  0x89   :  { %v190_v44 = vsel %vm38_vm1, 1.0, %v325_v42  ;;  %v191_v49 = vsel %vm39_vm3, 1.0, %v325_v42 }
  0x8a   :  { %v44_v47 = vadd.f32 %v190_v44, %v188_v43  ;;  %v45_v55 = vadd.f32 %v191_v49, %v189_v52 }
  0x8c   :  { %v50_v45 = vpop.permute.xlu1 %49  ;;  %v53_v46 = vpop.permute.xlu0 %52 }
  0x8d   :  { %vm54_vm2 = vcmp.eq.s32.totalorder %v15_v39, %v50_v45  ;;  %vm55_vm5 = vcmp.eq.s32.totalorder %v15_v39, %v53_v46 }
  0x8e   :  { %v192_v48 = vsel %vm54_vm2, 1.0, %v325_v42  ;;  %v193_v53 = vsel %vm55_vm5, 1.0, %v325_v42 }
  0x8f   :  { %v60_v51 = vadd.f32 %v192_v48, %v44_v47  ;;  %v61_v58 = vadd.f32 %v193_v53, %v45_v55 }
  0x91   :  { %v66_v50 = vpop.permute.xlu1 %65 }
  0x92   :  { %vm70_vm6 = vcmp.eq.s32.totalorder %v15_v39, %v66_v50 }
  0x93   :  { %v194_v54 = vsel %vm70_vm6, 1.0, %v325_v42 }
  0x94   :  { %v76_v56 = vadd.f32 %v194_v54, %v60_v51 }
  0x95   :  { %v69_v57 = vpop.permute.xlu1 %68 }
  0x96   :  { %vm71_vm7 = vcmp.eq.s32.totalorder %v15_v39, %v69_v57  ;;  %246 = vmatprep.mubr.f32.mxu0 %v76_v56 }
  0x97   :  { %v195_v59 = vsel %vm71_vm7, 1.0, %v325_v42 }
  0x98   :  { %v77_v60 = vadd.f32 %v195_v59, %v61_v58 }
  0x9a   :  { %247 = vmatmul.mubr.f32.vlgmr.msra.gmra.mrb[0].mxu0 %v77_v60 }
 0x16d   :  { %v248_v61 = vpop.f32.mrb[0].mxu0 }
 0x16e   :  { %171 = vst.msk [vmem:[#allocation2 + $0x8] sm:$0xff] %vm169_vm8, %v248_v61  ;;  %v160_v62 = vpop.f32.mrb[1].mxu0 }
 0x16f   :  { %170 = vst.msk [vmem:[#allocation2] sm:$0xff] %vm169_vm8, %v160_v62 }
 0x170   :  { %308 = shalt.err (!%p305_p4)
}
 0x171   :  { %s309_s0 = scalar_lea.hbm %s412_s2, 256 }
 0x172   :  { %p310_p5 = scmp.ne.s32.totalorder %s412_s2, %s309_s0  ;;  %p313_p6 = scmp.lt.u32.totalorder %s309_s0, %s412_s2 }
 0x174   :  { %p315_p7 = pnand %p313_p6, %p310_p5 }
 0x176   :  { %318 = shalt.err (!%p315_p7)
}
 0x177   :  { %s327_s24 = smov 128   ;;  %s328_s25 = smov 8  }
 0x178   :  { %183 = dma.vmem_to_hbm [thread:$0]  %s178_s16, 256, %s412_s2, [#allocation3], %s327_s24, %s327_s24, %s328_s25  }
 0x179   :  { %319 = dma.done.wait [#allocation3], 256  }
 0x17a   :  { %320 = vsyncadd [#allocation3], 4294967040 }
 0x17b   :  { %187 = vsyncpa [#allocation3], 1 }

</bundles_post_ra>
